<compile_context>
chip_gen: v6e
topology: v6e:2x2x1
jax: 0.10.0
libtpu: 0.0.40
codegen_flags: <defaults>
</compile_context>

<pallas_src>
import math

import jax
import jax.numpy as jnp
from jax.experimental import pallas as pl
from jax.experimental.pallas import tpu as pltpu


HIDDEN = 64          # logical hidden width (from the PyTorch module)
HIDDEN_PAD = 128     # lane-aligned padded hidden width
DEFAULT_TILE_B = 1024


# --------------------------------------------------------------------------
# Kernel: fused 3-layer MLP forward pass for one batch tile
# --------------------------------------------------------------------------
def mlp_kernel(x_ref, w1_ref, b1_ref, w2_ref, b2_ref, w3_ref, b3_ref, o_ref):
    x = x_ref[...]                                               # (TB, 198) bf16

    # Layer 1: Linear(198 -> 128pad) + ReLU   (MXU, f32 accumulate)
    h1 = jnp.dot(x, w1_ref[...], preferred_element_type=jnp.float32)
    h1 = jnp.maximum(h1 + b1_ref[...], 0.0)                      # (TB, 128) f32

    # Layer 2: Linear(128pad -> 128pad) + ReLU (MXU, bf16 operands, f32 acc)
    h2 = jnp.dot(h1.astype(jnp.bfloat16), w2_ref[...],
                 preferred_element_type=jnp.float32)
    h2 = jnp.maximum(h2 + b2_ref[...], 0.0)                      # (TB, 128) f32

    # Layer 3: Linear(128pad -> 1) + Sigmoid — VPU multiply + lane reduce
    # (avoids a 1-column MXU push/pop; XLU lane-reduce is otherwise idle here).
    logits = jnp.sum(h2 * w3_ref[...], axis=-1, keepdims=True)   # (TB, 1) f32
    logits = logits + b3_ref[...]
    o_ref[...] = jax.nn.sigmoid(logits).astype(o_ref.dtype)


# --------------------------------------------------------------------------
# Wrapper
# --------------------------------------------------------------------------
def _round_up(n, m):
    return ((n + m - 1) // m) * m


def backgammon_nn_v3_forward(x, params, tile_b=DEFAULT_TILE_B):
    """x: (B, 198) float32. params: dict of PyTorch-convention weights."""
    B, F = x.shape
    assert F == 198

    # ---- choose batch tile (multiple of 8 sublanes) and pad batch ----------
    tile_b = int(min(tile_b, max(8, _round_up(B, 8))))
    tile_b = _round_up(tile_b, 8)
    b_pad = _round_up(B, tile_b)
    if b_pad != B:
        x = jnp.pad(x, ((0, b_pad - B), (0, 0)))
    num_tiles = b_pad // tile_b

    # ---- prepare parameters -------------------------------------------------
    # PyTorch nn.Linear: y = x @ W.T + b, W stored (out, in) -> transpose to
    # (in, out).  Zero-pad hidden 64 -> 128 (padded units have zero weights,
    # zero biases, and zero W3 entries, so the output is unchanged).
    hp = HIDDEN_PAD - HIDDEN
    w1 = jnp.pad(params["w1"].T, ((0, 0), (0, hp)))              # (198, 128)
    b1 = jnp.pad(params["b1"], (0, hp)).reshape(1, HIDDEN_PAD)   # (1, 128)
    w2 = jnp.pad(params["w2"].T, ((0, hp), (0, hp)))             # (128, 128)
    b2 = jnp.pad(params["b2"], (0, hp)).reshape(1, HIDDEN_PAD)   # (1, 128)
    w3 = jnp.pad(params["w3"].reshape(-1), (0, hp)).reshape(1, HIDDEN_PAD)  # (1,128)
    b3 = params["b3"].reshape(1, 1)                              # (1, 1)

    # bf16 streaming for the big operands; biases & w3 row stay f32.
    x_bf = x.astype(jnp.bfloat16)
    w1_bf = w1.astype(jnp.bfloat16)
    w2_bf = w2.astype(jnp.bfloat16)
    b1 = b1.astype(jnp.float32)
    b2 = b2.astype(jnp.float32)
    w3 = w3.astype(jnp.float32)
    b3 = b3.astype(jnp.float32)

    # ---- specs (explicit, no late-bound lambdas) ----------------------------
    in_specs = [
        pl.BlockSpec((tile_b, 198), lambda i: (i, 0)),               # x tile
        pl.BlockSpec((198, HIDDEN_PAD), lambda i: (0, 0)),           # w1 (resident)
        pl.BlockSpec((1, HIDDEN_PAD), lambda i: (0, 0)),             # b1
        pl.BlockSpec((HIDDEN_PAD, HIDDEN_PAD), lambda i: (0, 0)),    # w2
        pl.BlockSpec((1, HIDDEN_PAD), lambda i: (0, 0)),             # b2
        pl.BlockSpec((1, HIDDEN_PAD), lambda i: (0, 0)),             # w3 row
        pl.BlockSpec((1, 1), lambda i: (0, 0)),                      # b3
    ]
    out_spec = pl.BlockSpec((tile_b, 1), lambda i: (i, 0))
    # TODO(synk): out block has lane width 1 (masked stores); output bytes are
    # ~1% of input bytes so left as-is per perf guidance.

    cost = pl.CostEstimate(
        flops=2 * b_pad * (198 * HIDDEN + HIDDEN * HIDDEN + HIDDEN),
        transcendentals=b_pad,  # sigmoid per row
        bytes_accessed=b_pad * (198 * 2 + 4)
        + w1_bf.size * 2 + w2_bf.size * 2
        + (b1.size + b2.size + w3.size + b3.size) * 4,
    )

    out = pl.pallas_call(
        mlp_kernel,
        out_shape=jax.ShapeDtypeStruct((b_pad, 1), jnp.float32),
        grid=(num_tiles,),
        in_specs=in_specs,
        out_specs=out_spec,
        compiler_params=pltpu.CompilerParams(
            dimension_semantics=("parallel",),
        ),
        cost_estimate=cost,
    )(x_bf, w1_bf, b1, w2_bf, b2, w3, b3)

    return out[:B]


# --------------------------------------------------------------------------
# Deterministic parameter init (PyTorch nn.Linear default: U(-1/sqrt(in), 1/sqrt(in)))
# --------------------------------------------------------------------------
def init_params(key):
    shapes = {
        "w1": (64, 198), "b1": (64,),
        "w2": (64, 64),  "b2": (64,),
        "w3": (1, 64),   "b3": (1,),
    }
    fan_in = {"w1": 198, "b1": 198, "w2": 64, "b2": 64, "w3": 64, "b3": 64}
    params = {}
    for name, shape in shapes.items():
        key, sub = jax.random.split(key)
        bound = 1.0 / math.sqrt(fan_in[name])
        params[name] = jax.random.uniform(
            sub, shape, dtype=jnp.float32, minval=-bound, maxval=bound
        )
    return params


def reference_forward(x, params):
    h1 = jnp.maximum(x @ params["w1"].T + params["b1"], 0.0)
    h2 = jnp.maximum(h1 @ params["w2"].T + params["b2"], 0.0)
    return jax.nn.sigmoid(h2 @ params["w3"].T + params["b3"])


if __name__ == "__main__":
    key = jax.random.PRNGKey(0)
    key, k_x = jax.random.split(key)

    B = 8
    # Backgammon feature encoding is in [0, ~6]; use small positive values.
    x = jax.random.uniform(k_x, (B, 198), dtype=jnp.float32)

    params = init_params(key)

    out = backgammon_nn_v3_forward(x, params)
    out = jax.block_until_ready(out)

    ref = reference_forward(x, params)
    assert out.shape == (B, 1)
    # bf16 streaming of x / W1 / W2 -> relax tolerance vs. the f32 reference.
    assert jnp.allclose(out, ref, atol=2e-2, rtol=2e-2), (out, ref)

    # Also exercise the tiled path (multiple grid steps + batch padding).
    key, k_big = jax.random.split(key)
    B_big = 2500  # not a multiple of the tile -> tests padding/slicing
    x_big = jax.random.uniform(k_big, (B_big, 198), dtype=jnp.float32)
    out_big = jax.block_until_ready(
        backgammon_nn_v3_forward(x_big, params, tile_b=1024)
    )
    ref_big = reference_forward(x_big, params)
    assert out_big.shape == (B_big, 1)
    assert jnp.allclose(out_big, ref_big, atol=2e-2, rtol=2e-2)

    print("KERNEL_OK")
</pallas_src>

<mosaic_0001>
module attributes {stable_mosaic.version = 11 : i64} {
  func.func @mlp_kernel(%arg0: i32, %arg1: memref<8x198xbf16, #tpu.memory_space<vmem>>, %arg2: memref<198x128xbf16, #tpu.memory_space<vmem>>, %arg3: memref<1x128xf32, #tpu.memory_space<vmem>>, %arg4: memref<128x128xbf16, #tpu.memory_space<vmem>>, %arg5: memref<1x128xf32, #tpu.memory_space<vmem>>, %arg6: memref<1x128xf32, #tpu.memory_space<vmem>>, %arg7: memref<1x1xf32, #tpu.memory_space<vmem>>, %arg8: memref<8x1xf32, #tpu.memory_space<vmem>>) attributes {dimension_semantics = [#tpu.dimension_semantics<parallel>], iteration_bounds = array<i64: 1>, scalar_prefetch = 0 : i64, scratch_operands = 0 : i64, tpu.core_type = #tpu.core_type<tc>, window_params = [{transform_indices = @transform_0, window_bounds = array<i64: 8, 198>}, {pipeline_mode = #tpu.pipeline_mode<synchronous>, transform_indices = @transform_1, window_bounds = array<i64: 198, 128>}, {pipeline_mode = #tpu.pipeline_mode<synchronous>, transform_indices = @transform_2, window_bounds = array<i64: 1, 128>}, {pipeline_mode = #tpu.pipeline_mode<synchronous>, transform_indices = @transform_3, window_bounds = array<i64: 128, 128>}, {pipeline_mode = #tpu.pipeline_mode<synchronous>, transform_indices = @transform_4, window_bounds = array<i64: 1, 128>}, {pipeline_mode = #tpu.pipeline_mode<synchronous>, transform_indices = @transform_5, window_bounds = array<i64: 1, 128>}, {pipeline_mode = #tpu.pipeline_mode<synchronous>, transform_indices = @transform_6, window_bounds = array<i64: 1, 1>}, {transform_indices = @transform_7, window_bounds = array<i64: 8, 1>}]} {
    %c0 = arith.constant 0 : index
    %c0_0 = arith.constant 0 : index
    %0 = vector.load %arg1[%c0, %c0_0] : memref<8x198xbf16, #tpu.memory_space<vmem>>, vector<8x198xbf16>
    %c0_1 = arith.constant 0 : index
    %c0_2 = arith.constant 0 : index
    %1 = vector.load %arg2[%c0_1, %c0_2] : memref<198x128xbf16, #tpu.memory_space<vmem>>, vector<198x128xbf16>
    %cst = arith.constant dense<0.000000e+00> : vector<8x128xf32>
    %2 = tpu.matmul %0, %1, %cst {dimension_numbers = #tpu.dot_dimension_numbers<[1], [0], [0], [1], [0, 0, 1, 1], [], []>} : vector<8x198xbf16>, vector<198x128xbf16>, vector<8x128xf32> -> vector<8x128xf32>
    %c0_3 = arith.constant 0 : index
    %c0_4 = arith.constant 0 : index
    %3 = vector.load %arg3[%c0_3, %c0_4] : memref<1x128xf32, #tpu.memory_space<vmem>>, vector<1x128xf32>
    %4 = vector.broadcast %3 : vector<1x128xf32> to vector<8x128xf32>
    %5 = arith.addf %2, %4 : vector<8x128xf32>
    %cst_5 = arith.constant 0.000000e+00 : f32
    %6 = vector.broadcast %cst_5 : f32 to vector<8x128xf32>
    %7 = arith.maximumf %5, %6 : vector<8x128xf32>
    %8 = arith.truncf %7 : vector<8x128xf32> to vector<8x128xbf16>
    %c0_6 = arith.constant 0 : index
    %c0_7 = arith.constant 0 : index
    %9 = vector.load %arg4[%c0_6, %c0_7] : memref<128x128xbf16, #tpu.memory_space<vmem>>, vector<128x128xbf16>
    %cst_8 = arith.constant dense<0.000000e+00> : vector<8x128xf32>
    %10 = tpu.matmul %8, %9, %cst_8 {dimension_numbers = #tpu.dot_dimension_numbers<[1], [0], [0], [1], [0, 0, 1, 1], [], []>} : vector<8x128xbf16>, vector<128x128xbf16>, vector<8x128xf32> -> vector<8x128xf32>
    %c0_9 = arith.constant 0 : index
    %c0_10 = arith.constant 0 : index
    %11 = vector.load %arg5[%c0_9, %c0_10] : memref<1x128xf32, #tpu.memory_space<vmem>>, vector<1x128xf32>
    %12 = vector.broadcast %11 : vector<1x128xf32> to vector<8x128xf32>
    %13 = arith.addf %10, %12 : vector<8x128xf32>
    %cst_11 = arith.constant 0.000000e+00 : f32
    %14 = vector.broadcast %cst_11 : f32 to vector<8x128xf32>
    %15 = arith.maximumf %13, %14 : vector<8x128xf32>
    %c0_12 = arith.constant 0 : index
    %c0_13 = arith.constant 0 : index
    %16 = vector.load %arg6[%c0_12, %c0_13] : memref<1x128xf32, #tpu.memory_space<vmem>>, vector<1x128xf32>
    %17 = vector.broadcast %16 : vector<1x128xf32> to vector<8x128xf32>
    %18 = arith.mulf %15, %17 : vector<8x128xf32>
    %cst_14 = arith.constant dense<0.000000e+00> : vector<8xf32>
    %19 = vector.multi_reduction <add>, %18, %cst_14 [1] : vector<8x128xf32> to vector<8xf32>
    %20 = vector.shape_cast %19 : vector<8xf32> to vector<8x1xf32>
    %c0_15 = arith.constant 0 : index
    %c0_16 = arith.constant 0 : index
    %21 = vector.load %arg7[%c0_15, %c0_16] : memref<1x1xf32, #tpu.memory_space<vmem>>, vector<1x1xf32>
    %22 = vector.broadcast %21 : vector<1x1xf32> to vector<8x1xf32>
    %23 = arith.addf %20, %22 : vector<8x1xf32>
    %24 = arith.negf %23 : vector<8x1xf32>
    %25 = math.exp %24 : vector<8x1xf32>
    %cst_17 = arith.constant 1.000000e+00 : f32
    %26 = vector.broadcast %cst_17 : f32 to vector<8x1xf32>
    %27 = arith.addf %26, %25 : vector<8x1xf32>
    %28 = arith.divf %26, %27 : vector<8x1xf32>
    %c0_18 = arith.constant 0 : index
    %c0_19 = arith.constant 0 : index
    %29 = vector.load %arg8[%c0_18, %c0_19] : memref<8x1xf32, #tpu.memory_space<vmem>>, vector<8x1xf32>
    tpu.vector_store %arg8[%c0_18, %c0_19], %28 {strides = array<i32>} : memref<8x1xf32, #tpu.memory_space<vmem>>, vector<8x1xf32>,
    return
  }
  func.func @transform_0(%arg0: i32) -> (i32, i32) {
    %c0_i32 = arith.constant 0 : i32
    %c0_i32_0 = arith.constant 0 : i32
    return %arg0, %c0_i32 : i32, i32
  }
  func.func @transform_1(%arg0: i32) -> (i32, i32) {
    %c0_i32 = arith.constant 0 : i32
    %c0_i32_0 = arith.constant 0 : i32
    %c0_i32_1 = arith.constant 0 : i32
    return %c0_i32, %c0_i32_0 : i32, i32
  }
  func.func @transform_2(%arg0: i32) -> (i32, i32) {
    %c0_i32 = arith.constant 0 : i32
    %c0_i32_0 = arith.constant 0 : i32
    %c0_i32_1 = arith.constant 0 : i32
    return %c0_i32, %c0_i32_0 : i32, i32
  }
  func.func @transform_3(%arg0: i32) -> (i32, i32) {
    %c0_i32 = arith.constant 0 : i32
    %c0_i32_0 = arith.constant 0 : i32
    %c0_i32_1 = arith.constant 0 : i32
    return %c0_i32, %c0_i32_0 : i32, i32
  }
  func.func @transform_4(%arg0: i32) -> (i32, i32) {
    %c0_i32 = arith.constant 0 : i32
    %c0_i32_0 = arith.constant 0 : i32
    %c0_i32_1 = arith.constant 0 : i32
    return %c0_i32, %c0_i32_0 : i32, i32
  }
  func.func @transform_5(%arg0: i32) -> (i32, i32) {
    %c0_i32 = arith.constant 0 : i32
    %c0_i32_0 = arith.constant 0 : i32
    %c0_i32_1 = arith.constant 0 : i32
    return %c0_i32, %c0_i32_0 : i32, i32
  }
  func.func @transform_6(%arg0: i32) -> (i32, i32) {
    %c0_i32 = arith.constant 0 : i32
    %c0_i32_0 = arith.constant 0 : i32
    %c0_i32_1 = arith.constant 0 : i32
    return %c0_i32, %c0_i32_0 : i32, i32
  }
  func.func @transform_7(%arg0: i32) -> (i32, i32) {
    %c0_i32 = arith.constant 0 : i32
    %c0_i32_0 = arith.constant 0 : i32
    return %arg0, %c0_i32 : i32, i32
  }
}

</mosaic_0001>

<bundles_post_ra>
// kernel: tpu_custom_call.1
= control target key start
LH: loop header
LB: loop body
LE: loop exit
PB: predicated region body
PF: predicated region fallthrough
CT: control target
= control target key end

     0   :  { %s627_s0 = inlined_call_operand.hbm [shape: bf16[8,198], index: 0, kind: input, shape index: {}]   ;;  %s628_s1 = inlined_call_operand.hbm [shape: bf16[198,128], index: 1, kind: input, shape index: {}]   ;;  %s629_s2 = inlined_call_operand.vmem [shape: f32[1,128], index: 2, kind: input, shape index: {}]   ;;  %s630_s3 = inlined_call_operand.hbm [shape: bf16[128,128], index: 3, kind: input, shape index: {}]   ;;  %s631_s4 = inlined_call_operand.vmem [shape: f32[1,128], index: 4, kind: input, shape index: {}]   ;;  %s632_s5 = inlined_call_operand.vmem [shape: f32[1,128], index: 5, kind: input, shape index: {}]   ;;  %s633_s6 = inlined_call_operand.<no memory space> [shape: f32[1,1], index: 6, kind: input, shape index: {}]   ;;  %s634_s7 = inlined_call_operand.vmem [shape: f32[8,1], index: 7, kind: output, shape index: {}]  }
   0x1   :  { %v12_v0 = vstv %s633_s6 }
   0x2   :  { %13 = vst [vmem:[#allocation2] sm:$0x1] %v12_v0 }
   0x3   :  { %14 = vsyncpa [#allocation4], 0 }
   0x4   :  { %15 = vsyncpa [#allocation6], 0  ;;  %s533_s26 = smov [#allocation5]  }
   0x5   :  { %s31_s27 = sshll.u32 %s533_s26, 4  ;;  %s32_s27 = int_to_ptr.vmem [resolvable:$true] %s31_s27 }
   0x6   :  { %s477_s28 = scalar_lea.vmem %s32_s27, 1600  ;;  %p482_p1 = scmp.lt.s32.totalorder %s32_s27, %s32_s27 }
   0x7   :  { %p478_p0 = scmp.ne.s32.totalorder %s32_s27, %s477_s28  ;;  %p483_p2 = scmp.lt.s32.totalorder %s477_s28, %s477_s28 }
   0x9   :  { %p484_p3 = por %p483_p2, %p482_p1 }
   0xb   :  { %p485_p4 = pnand %p484_p3, %p478_p0 }
   0xd   :  { %488 = shalt.err (!%p485_p4)
}
   0xe   :  { %s534_s29 = smov 64   ;;  %s535_s30 = smov 4  }
   0xf   :  { %37 = dma.hbm_to_vmem [thread:$0]  %s628_s1, 1600, %s32_s27, [#allocation6], %s534_s29, %s534_s29, %s535_s30  }
  0x10   :  { %s536_s6 = smov [#allocation3]   ;;  %s537_s11 = smov [#allocation7]  }
  0x11   :  { %s22_s10 = sshll.u32 %s536_s6, 4  ;;  %s45_s12 = sshll.u32 %s537_s11, 4  ;;  %s23_s10 = int_to_ptr.vmem [resolvable:$true] %s22_s10  ;;  %s46_s12 = int_to_ptr.vmem [resolvable:$true] %s45_s12 }
  0x12   :  { %s497_s13 = scalar_lea.vmem %s23_s10, 128  ;;  %p502_p6 = scmp.lt.s32.totalorder %s23_s10, %s23_s10 }
  0x13   :  { %p498_p5 = scmp.ne.s32.totalorder %s23_s10, %s497_s13  ;;  %p503_p7 = scmp.lt.s32.totalorder %s497_s13, %s497_s13 }
  0x15   :  { %p504_p8 = por %p503_p7, %p502_p6 }
  0x17   :  { %p505_p9 = pnand %p504_p8, %p498_p5 }
  0x19   :  { %508 = shalt.err (!%p505_p9)
}
  0x1a   :  { %25 = dma.hbm_to_vmem [thread:$0]  %s627_s0, 128, %s23_s10, [#allocation4]  }
  0x1b   :  { %s517_s16 = scalar_lea.vmem %s46_s12, 1024  ;;  %p522_p11 = scmp.lt.s32.totalorder %s46_s12, %s46_s12 }
  0x1c   :  { %p518_p10 = scmp.ne.s32.totalorder %s46_s12, %s517_s16  ;;  %p523_p12 = scmp.lt.s32.totalorder %s517_s16, %s517_s16 }
  0x1e   :  { %p524_p13 = por %p523_p12, %p522_p11 }
  0x20   :  { %p525_p0 = pnand %p524_p13, %p518_p10 }
  0x22   :  { %528 = shalt.err (!%p525_p0)
}
  0x23   :  { %51 = dma.hbm_to_vmem [thread:$0]  %s630_s3, 1024, %s46_s12, [#allocation6], %s534_s29, %s534_s29, %s535_s30  }
  0x24   :  { %529 = dma.done.wait [#allocation4], 128  }
  0x25   :  { %530 = vsyncadd [#allocation4], 4294967168 }
  0x26   :  { %531 = dma.done.wait [#allocation6], 2624  }
  0x27   :  { %532 = vsyncadd [#allocation6], 4294964672  ;;  %v538_v1 = vmov 0   ;;  %v539_v2 = vmov 0.0   ;;  %v442_v3 = vld [vmem:[#allocation5 + $0x38] sm:$0xff]   ;;  %v443_v4 = vld [vmem:[#allocation5 + $0x30] sm:$0xff]  }
  0x28   :  { %190 = vmatprep.subr.bf16.mxu0 %v538_v1  ;;  %414 = vmatprep.subr.bf16.mxu1 %v539_v2  ;;  %v444_v5 = vld [vmem:[#allocation5 + $0x28] sm:$0xff]   ;;  %v445_v6 = vld [vmem:[#allocation5 + $0x20] sm:$0xff]   ;;  %v68_v7 = vld [vmem:[#allocation3] sm:$0xff]  ;;  %vm182_vm0 = vcmask 572416   ;;  %vm186_vm1 = vcmask 1042432   ;;  %vm540_vm2 = vmmov 0  }
  0x29   :  { %191 = vmatpush1.bf16.msra.mxu0 %v442_v3  ;;  %v378_v8 = vcombine.high %v68_v7, %v68_v7  ;;  %v457_v9 = vld [vmem:[#allocation7 + $0x38] sm:$0xff]   ;;  %v458_v11 = vld [vmem:[#allocation7 + $0x30] sm:$0xff]   ;;  %v459_v13 = vld [vmem:[#allocation7 + $0x28] sm:$0xff]   ;;  %v377_v25 = vcombine.low %v68_v7, %v68_v7  ;;  %430 = vmatprep.mubr.msk.bf16.mxu1 %vm540_vm2, %v539_v2  ;;  %vm368_vm3 = vcmask 7168  }
  0x2a   :  { %192 = vmatprep.subr.bf16.mxu0 %v538_v1  ;;  %v446_v10 = vld [vmem:[#allocation5 + $0x18] sm:$0xff]   ;;  %415 = vmatpush3.bf16.msra.mxu1 %v457_v9  ;;  %v447_v12 = vld [vmem:[#allocation5 + $0x10] sm:$0xff]   ;;  %v448_v14 = vld [vmem:[#allocation5 + $0x8] sm:$0xff]  }
  0x2b   :  { %392 = vmatprep.mubr.msk.bf16.mxu0 %vm182_vm0, %v378_v8  ;;  %416 = vmatprep.subr.bf16.mxu1 %v539_v2  ;;  %v460_v15 = vld [vmem:[#allocation7 + $0x20] sm:$0xff]   ;;  %v450_v17 = vld [vmem:[#allocation5 + $0x60] ss:$0 sps:$4 sm:$0x77]   ;;  %v462_v20 = vld [vmem:[#allocation7 + $0x10] sm:$0xff]  }
  0x2c   :  { %v449_v16 = vld [vmem:[#allocation5] sm:$0xff]   ;;  %v188_v19 = vsel %vm186_vm1, %v450_v17, 0  ;;  %v451_v21 = vld [vmem:[#allocation5 + $0x58] sm:$0xff]   ;;  %v452_v22 = vld [vmem:[#allocation5 + $0x50] sm:$0xff]  }
  0x2d   :  { %193 = vmatpush1.bf16.msra.mxu0 %v443_v4  ;;  %v461_v18 = vld [vmem:[#allocation7 + $0x18] sm:$0xff]   ;;  %v453_v23 = vld [vmem:[#allocation5 + $0x48] sm:$0xff]   ;;  %v376_v28 = vld [vmem:[%s629_s2] ss:$0 sm:$0xff] }
  0x2e   :  { %194 = vmatprep.subr.bf16.mxu0 %v538_v1  ;;  %417 = vmatpush3.bf16.msra.mxu1 %v458_v11  ;;  %v454_v24 = vld [vmem:[#allocation5 + $0x40] sm:$0xff]   ;;  %v463_v26 = vld [vmem:[#allocation7 + $0x8] sm:$0xff]   ;;  %v393_v36 = vld [vmem:[%s631_s4] ss:$0 sm:$0xff] }
  0x2f   :  { %418 = vmatprep.subr.bf16.mxu1 %v539_v2  ;;  %v464_v27 = vld [vmem:[#allocation7] sm:$0xff]   ;;  %v402_v40 = vld [vmem:[%s632_s5] ss:$0 sm:$0xff] }
  0x30   :  { %v403_v45 = vld [vmem:[#allocation2] ss:$0 sm:$0xff] }
  0x31   :  { %195 = vmatpush1.bf16.msra.mxu0 %v444_v5 }
  0x32   :  { %196 = vmatprep.subr.bf16.mxu0 %v538_v1  ;;  %419 = vmatpush3.bf16.msra.mxu1 %v459_v13 }
  0x33   :  { %420 = vmatprep.subr.bf16.mxu1 %v539_v2 }
  0x35   :  { %197 = vmatpush1.bf16.msra.mxu0 %v445_v6 }
  0x36   :  { %198 = vmatprep.subr.bf16.mxu0 %v538_v1  ;;  %421 = vmatpush3.bf16.msra.mxu1 %v460_v15 }
  0x37   :  { %422 = vmatprep.subr.bf16.mxu1 %v539_v2 }
  0x39   :  { %199 = vmatpush1.bf16.msra.mxu0 %v446_v10 }
  0x3a   :  { %200 = vmatprep.subr.bf16.mxu0 %v538_v1  ;;  %423 = vmatpush3.bf16.msra.mxu1 %v461_v18 }
  0x3b   :  { %424 = vmatprep.subr.bf16.mxu1 %v539_v2 }
  0x3d   :  { %201 = vmatpush1.bf16.msra.mxu0 %v447_v12 }
  0x3e   :  { %202 = vmatprep.subr.bf16.mxu0 %v538_v1  ;;  %425 = vmatpush3.bf16.msra.mxu1 %v462_v20 }
  0x3f   :  { %426 = vmatprep.subr.bf16.mxu1 %v539_v2 }
  0x41   :  { %203 = vmatpush1.bf16.msra.mxu0 %v448_v14 }
  0x42   :  { %204 = vmatprep.subr.bf16.mxu0 %v538_v1  ;;  %427 = vmatpush3.bf16.msra.mxu1 %v463_v26 }
  0x43   :  { %428 = vmatprep.subr.bf16.mxu1 %v539_v2 }
  0x45   :  { %205 = vmatpush1.bf16.msra.mxu0 %v449_v16 }
  0x46   :  { %212 = vmatprep.subr.bf16.mxu0 %v538_v1  ;;  %429 = vmatpush3.bf16.msra.mxu1 %v464_v27 }
  0x49   :  { %213 = vmatpush2.bf16.msra.mxu0 %v188_v19 }
  0x4a   :  { %214 = vmatprep.subr.bf16.mxu0 %v538_v1 }
  0x4d   :  { %215 = vmatpush2.bf16.msra.mxu0 %v451_v21 }
  0x4e   :  { %216 = vmatprep.subr.bf16.mxu0 %v538_v1 }
  0x51   :  { %217 = vmatpush2.bf16.msra.mxu0 %v452_v22 }
  0x52   :  { %218 = vmatprep.subr.bf16.mxu0 %v538_v1 }
  0x55   :  { %219 = vmatpush2.bf16.msra.mxu0 %v453_v23 }
  0x56   :  { %220 = vmatprep.subr.bf16.mxu0 %v538_v1 }
  0x59   :  { %221 = vmatpush2.bf16.msra.mxu0 %v454_v24 }
  0x5c   :  { %223 = vmatmul.mubr.bf16.vlgmr.msra.gmra.mxu0 %v377_v25 }
 0x11c   :  { %v224_v29 = vpop.f32.mrf.mxu0 }
 0x11d   :  { %v225_v30 = vadd.f32 %v376_v28, %v224_v29 }
 0x11e   :  { %v226_v31 = vpop.f32.mrf.mxu0 }
 0x11f   :  { %v230_v32 = vmax.f32 %v225_v30, 0.0 }
 0x120   :  { %v227_v33 = vpop.f32.mrf.mxu0 }
 0x121   :  { %v231_v34 = vpack.c.bf16 %v230_v32, %v230_v32 }
 0x122   :  { %v228_v35 = vpop.f32.mrf.mxu0 }
 0x123   :  { %431 = vmatmul.mubr.bf16.vlgmr.msra.gmra.mxu1 %v231_v34 }
 0x1e3   :  { %v337_v37 = vpop.f32.mrf.mxu1 }
 0x1e4   :  { %v338_v38 = vadd.f32 %v393_v36, %v337_v37 }
 0x1e5   :  { %v432_v39 = vpop.f32.mrf.mxu1 }
 0x1e6   :  { %v343_v41 = vmax.f32 %v338_v38, 0.0 }
 0x1e7   :  { %v340_v42 = vpop.f32.mrf.mxu1 }
 0x1e8   :  { %v351_v43 = vmul.f32 %v402_v40, %v343_v41 }
 0x1e9   :  { %v433_v44 = vpop.f32.mrf.mxu1 }
 0x1ea   :  { %352 = vadd.xlane.f32.xlu0 %v351_v43 }
 0x273   :  { %v353_v46 = vpop.xlane.xlu0 %352 }
 0x274   :  { %v361_v47 = vadd.f32 %v403_v45, %v353_v46 }
 0x276   :  { %v404_v48 = vmul.f32 -1.442695, %v361_v47 }
 0x278   :  { %465 = vpow2.f32 %v404_v48 }
 0x285   :  { %v466_v49 = vpop.eup %465 }
 0x286   :  { %v365_v50 = vadd.f32 1.0, %v466_v49 }
 0x288   :  { %467 = vrcp.f32 %v365_v50 }
 0x295   :  { %v468_v51 = vpop.eup %467 }
 0x296   :  { %369 = vst.msk [vmem:[%s634_s7] sm:$0xff] %vm368_vm3, %v468_v51 }
 0x297   :  { %374 = vsyncpa [#allocation4], 1 }
 0x298   :  { %375 = vsyncpa [#allocation6], 1 }

</bundles_post_ra>
